<compile_context>
chip_gen: v6e
topology: v6e:2x2x1
jax: 0.10.0
libtpu: 0.0.40
codegen_flags: <defaults>
</compile_context>

<pallas_src>
import jax
import jax.numpy as jnp
from jax.experimental import pallas as pl
from jax.experimental.pallas import tpu as pltpu

TILE_B = 2048   # max rows per grid step (amortizes per-step overhead)


def _round_up(n, m):
    return ((n + m - 1) // m) * m


def _mlp_kernel(x_ref,
                w1_ref, b1_ref,
                w2_ref, b2_ref,
                w3_ref, b3_ref,
                w4_ref, b4_ref,
                o_ref):
    """Fused forward: relu(relu(relu(x@W1+b1)@W2+b2)@W3+b3)@W4+b4.

    x arrives f32 and is cast to bf16 in-kernel (MXU path); accumulation,
    bias add and ReLU stay f32 (v5e-friendly VPU work).
    """
    x = x_ref[...].astype(jnp.bfloat16)                             # (TB, F) bf16

    h = jnp.dot(x, w1_ref[...], preferred_element_type=jnp.float32) + b1_ref[...]
    h = jnp.maximum(h, 0.0)

    h = jnp.dot(h.astype(jnp.bfloat16), w2_ref[...],
                preferred_element_type=jnp.float32) + b2_ref[...]
    h = jnp.maximum(h, 0.0)

    h = jnp.dot(h.astype(jnp.bfloat16), w3_ref[...],
                preferred_element_type=jnp.float32) + b3_ref[...]
    h = jnp.maximum(h, 0.0)

    out = jnp.dot(h.astype(jnp.bfloat16), w4_ref[...],
                  preferred_element_type=jnp.float32) + b4_ref[...]
    o_ref[...] = out.astype(o_ref.dtype)                            # (TB, O) f32


@jax.jit
def multi_output_nn_forward(x, params):
    """Runs the fused MLP kernel.

    x: [B, F] float32
    params: dict w1..w4 as [in, out] f32, b1..b4 as [1, out] f32.
    """
    batch, num_features = x.shape
    num_outputs = params["w4"].shape[1]

    # bf16 weights for the MXU (cast once, tiny, resident in VMEM).
    w1 = params["w1"].astype(jnp.bfloat16)
    w2 = params["w2"].astype(jnp.bfloat16)
    w3 = params["w3"].astype(jnp.bfloat16)
    w4 = params["w4"].astype(jnp.bfloat16)
    b1, b2, b3, b4 = params["b1"], params["b2"], params["b3"], params["b4"]  # f32

    # Batch tiling: big tiles to amortize per-step overhead, but capped at
    # ~half the batch so the grid has >= 2 steps (keeps both v7x TCs fed).
    # No wrapper-side padding of x: the ragged last tile is masked by Pallas.
    tile_b = min(TILE_B, _round_up(pl.cdiv(batch, 2), 8))
    n_tiles = pl.cdiv(batch, tile_b)

    flops = 2 * batch * (num_features * 64 + 64 * 128 + 128 * 64
                         + 64 * num_outputs)
    bytes_accessed = (
        batch * num_features * 4                    # x (f32 read)
        + batch * num_outputs * 4                   # out (f32 write)
        + (w1.size + w2.size + w3.size + w4.size) * 2
        + (b1.size + b2.size + b3.size + b4.size) * 4)

    out = pl.pallas_call(
        _mlp_kernel,
        out_shape=jax.ShapeDtypeStruct((batch, num_outputs), jnp.float32),
        grid=(n_tiles,),
        in_specs=[
            pl.BlockSpec((tile_b, num_features), lambda i: (i, 0)),   # x tile
            pl.BlockSpec(w1.shape, lambda i: (0, 0)),                 # resident
            pl.BlockSpec(b1.shape, lambda i: (0, 0)),
            pl.BlockSpec(w2.shape, lambda i: (0, 0)),
            pl.BlockSpec(b2.shape, lambda i: (0, 0)),
            pl.BlockSpec(w3.shape, lambda i: (0, 0)),
            pl.BlockSpec(b3.shape, lambda i: (0, 0)),
            pl.BlockSpec(w4.shape, lambda i: (0, 0)),
            pl.BlockSpec(b4.shape, lambda i: (0, 0)),
        ],
        out_specs=pl.BlockSpec((tile_b, num_outputs), lambda i: (i, 0)),
        compiler_params=pltpu.CompilerParams(
            dimension_semantics=("parallel",),
            vmem_limit_bytes=32 * 1024 * 1024),
        cost_estimate=pl.CostEstimate(
            flops=flops, transcendentals=0, bytes_accessed=bytes_accessed),
    )(x, w1, b1, w2, b2, w3, b3, w4, b4)

    return out


def init_params(key, num_features, num_outputs):
    """nn.Linear default init: U(-1/sqrt(fan_in), 1/sqrt(fan_in))."""
    dims = [(num_features, 64), (64, 128), (128, 64), (64, num_outputs)]
    params = {}
    for i, (fan_in, fan_out) in enumerate(dims, start=1):
        key, kw, kb = jax.random.split(key, 3)
        bound = 1.0 / jnp.sqrt(float(fan_in))
        params[f"w{i}"] = jax.random.uniform(
            kw, (fan_in, fan_out), jnp.float32, minval=-bound, maxval=bound)
        params[f"b{i}"] = jax.random.uniform(
            kb, (1, fan_out), jnp.float32, minval=-bound, maxval=bound)
    return params


def reference_forward(x, params):
    """Pure-JAX f32 reference of the PyTorch forward."""
    h = jnp.maximum(x @ params["w1"] + params["b1"], 0.0)
    h = jnp.maximum(h @ params["w2"] + params["b2"], 0.0)
    h = jnp.maximum(h @ params["w3"] + params["b3"], 0.0)
    return h @ params["w4"] + params["b4"]


if __name__ == "__main__":
    num_features = 32
    num_outputs = 8

    key = jax.random.PRNGKey(0)
    key, kp = jax.random.split(key)
    params = init_params(kp, num_features, num_outputs)

    # Small case (single tile).
    key, kx = jax.random.split(key)
    x_small = jax.random.normal(kx, (8, num_features), jnp.float32)
    out_small = jax.block_until_ready(multi_output_nn_forward(x_small, params))
    ref_small = reference_forward(x_small, params)
    assert out_small.shape == (8, num_outputs)
    assert jnp.allclose(out_small, ref_small, atol=5e-2, rtol=5e-2), \
        "mismatch vs reference (small batch)"

    # Ragged batch (exercises batch tiling, grid > 1, masked last tile).
    key, kx2 = jax.random.split(key)
    x_big = jax.random.normal(kx2, (300, num_features), jnp.float32)
    out_big = jax.block_until_ready(multi_output_nn_forward(x_big, params))
    ref_big = reference_forward(x_big, params)
    assert out_big.shape == (300, num_outputs)
    assert jnp.allclose(out_big, ref_big, atol=5e-2, rtol=5e-2), \
        "mismatch vs reference (tiled batch)"

    print("KERNEL_OK")
</pallas_src>

<mosaic_0001>
module attributes {stable_mosaic.version = 11 : i64} {
  func.func @_mlp_kernel(%arg0: i32, %arg1: memref<8x32xf32, #tpu.memory_space<vmem>>, %arg2: memref<32x64xbf16, #tpu.memory_space<vmem>>, %arg3: memref<1x64xf32, #tpu.memory_space<vmem>>, %arg4: memref<64x128xbf16, #tpu.memory_space<vmem>>, %arg5: memref<1x128xf32, #tpu.memory_space<vmem>>, %arg6: memref<128x64xbf16, #tpu.memory_space<vmem>>, %arg7: memref<1x64xf32, #tpu.memory_space<vmem>>, %arg8: memref<64x8xbf16, #tpu.memory_space<vmem>>, %arg9: memref<1x8xf32, #tpu.memory_space<vmem>>, %arg10: memref<8x8xf32, #tpu.memory_space<vmem>>) attributes {dimension_semantics = [#tpu.dimension_semantics<parallel>], iteration_bounds = array<i64: 1>, scalar_prefetch = 0 : i64, scratch_operands = 0 : i64, tpu.core_type = #tpu.core_type<tc>, window_params = [{transform_indices = @transform_0, window_bounds = array<i64: 8, 32>}, {pipeline_mode = #tpu.pipeline_mode<synchronous>, transform_indices = @transform_1, window_bounds = array<i64: 32, 64>}, {pipeline_mode = #tpu.pipeline_mode<synchronous>, transform_indices = @transform_2, window_bounds = array<i64: 1, 64>}, {pipeline_mode = #tpu.pipeline_mode<synchronous>, transform_indices = @transform_3, window_bounds = array<i64: 64, 128>}, {pipeline_mode = #tpu.pipeline_mode<synchronous>, transform_indices = @transform_4, window_bounds = array<i64: 1, 128>}, {pipeline_mode = #tpu.pipeline_mode<synchronous>, transform_indices = @transform_5, window_bounds = array<i64: 128, 64>}, {pipeline_mode = #tpu.pipeline_mode<synchronous>, transform_indices = @transform_6, window_bounds = array<i64: 1, 64>}, {pipeline_mode = #tpu.pipeline_mode<synchronous>, transform_indices = @transform_7, window_bounds = array<i64: 64, 8>}, {pipeline_mode = #tpu.pipeline_mode<synchronous>, transform_indices = @transform_8, window_bounds = array<i64: 1, 8>}, {transform_indices = @transform_9, window_bounds = array<i64: 8, 8>}]} {
    %c0 = arith.constant 0 : index
    %c0_0 = arith.constant 0 : index
    %0 = vector.load %arg1[%c0, %c0_0] : memref<8x32xf32, #tpu.memory_space<vmem>>, vector<8x32xf32>
    %1 = arith.truncf %0 : vector<8x32xf32> to vector<8x32xbf16>
    %c0_1 = arith.constant 0 : index
    %c0_2 = arith.constant 0 : index
    %2 = vector.load %arg2[%c0_1, %c0_2] : memref<32x64xbf16, #tpu.memory_space<vmem>>, vector<32x64xbf16>
    %cst = arith.constant dense<0.000000e+00> : vector<8x64xf32>
    %3 = tpu.matmul %1, %2, %cst {dimension_numbers = #tpu.dot_dimension_numbers<[1], [0], [0], [1], [0, 0, 1, 1], [], []>} : vector<8x32xbf16>, vector<32x64xbf16>, vector<8x64xf32> -> vector<8x64xf32>
    %c0_3 = arith.constant 0 : index
    %c0_4 = arith.constant 0 : index
    %4 = vector.load %arg3[%c0_3, %c0_4] : memref<1x64xf32, #tpu.memory_space<vmem>>, vector<1x64xf32>
    %5 = vector.broadcast %4 : vector<1x64xf32> to vector<8x64xf32>
    %6 = arith.addf %3, %5 : vector<8x64xf32>
    %cst_5 = arith.constant 0.000000e+00 : f32
    %7 = vector.broadcast %cst_5 : f32 to vector<8x64xf32>
    %8 = arith.maximumf %6, %7 : vector<8x64xf32>
    %9 = arith.truncf %8 : vector<8x64xf32> to vector<8x64xbf16>
    %c0_6 = arith.constant 0 : index
    %c0_7 = arith.constant 0 : index
    %10 = vector.load %arg4[%c0_6, %c0_7] : memref<64x128xbf16, #tpu.memory_space<vmem>>, vector<64x128xbf16>
    %cst_8 = arith.constant dense<0.000000e+00> : vector<8x128xf32>
    %11 = tpu.matmul %9, %10, %cst_8 {dimension_numbers = #tpu.dot_dimension_numbers<[1], [0], [0], [1], [0, 0, 1, 1], [], []>} : vector<8x64xbf16>, vector<64x128xbf16>, vector<8x128xf32> -> vector<8x128xf32>
    %c0_9 = arith.constant 0 : index
    %c0_10 = arith.constant 0 : index
    %12 = vector.load %arg5[%c0_9, %c0_10] : memref<1x128xf32, #tpu.memory_space<vmem>>, vector<1x128xf32>
    %13 = vector.broadcast %12 : vector<1x128xf32> to vector<8x128xf32>
    %14 = arith.addf %11, %13 : vector<8x128xf32>
    %cst_11 = arith.constant 0.000000e+00 : f32
    %15 = vector.broadcast %cst_11 : f32 to vector<8x128xf32>
    %16 = arith.maximumf %14, %15 : vector<8x128xf32>
    %17 = arith.truncf %16 : vector<8x128xf32> to vector<8x128xbf16>
    %c0_12 = arith.constant 0 : index
    %c0_13 = arith.constant 0 : index
    %18 = vector.load %arg6[%c0_12, %c0_13] : memref<128x64xbf16, #tpu.memory_space<vmem>>, vector<128x64xbf16>
    %cst_14 = arith.constant dense<0.000000e+00> : vector<8x64xf32>
    %19 = tpu.matmul %17, %18, %cst_14 {dimension_numbers = #tpu.dot_dimension_numbers<[1], [0], [0], [1], [0, 0, 1, 1], [], []>} : vector<8x128xbf16>, vector<128x64xbf16>, vector<8x64xf32> -> vector<8x64xf32>
    %c0_15 = arith.constant 0 : index
    %c0_16 = arith.constant 0 : index
    %20 = vector.load %arg7[%c0_15, %c0_16] : memref<1x64xf32, #tpu.memory_space<vmem>>, vector<1x64xf32>
    %21 = vector.broadcast %20 : vector<1x64xf32> to vector<8x64xf32>
    %22 = arith.addf %19, %21 : vector<8x64xf32>
    %cst_17 = arith.constant 0.000000e+00 : f32
    %23 = vector.broadcast %cst_17 : f32 to vector<8x64xf32>
    %24 = arith.maximumf %22, %23 : vector<8x64xf32>
    %25 = arith.truncf %24 : vector<8x64xf32> to vector<8x64xbf16>
    %c0_18 = arith.constant 0 : index
    %c0_19 = arith.constant 0 : index
    %26 = vector.load %arg8[%c0_18, %c0_19] : memref<64x8xbf16, #tpu.memory_space<vmem>>, vector<64x8xbf16>
    %cst_20 = arith.constant dense<0.000000e+00> : vector<8x8xf32>
    %27 = tpu.matmul %25, %26, %cst_20 {dimension_numbers = #tpu.dot_dimension_numbers<[1], [0], [0], [1], [0, 0, 1, 1], [], []>} : vector<8x64xbf16>, vector<64x8xbf16>, vector<8x8xf32> -> vector<8x8xf32>
    %c0_21 = arith.constant 0 : index
    %c0_22 = arith.constant 0 : index
    %28 = vector.load %arg9[%c0_21, %c0_22] : memref<1x8xf32, #tpu.memory_space<vmem>>, vector<1x8xf32>
    %29 = vector.broadcast %28 : vector<1x8xf32> to vector<8x8xf32>
    %30 = arith.addf %27, %29 : vector<8x8xf32>
    %c0_23 = arith.constant 0 : index
    %c0_24 = arith.constant 0 : index
    %31 = vector.load %arg10[%c0_23, %c0_24] : memref<8x8xf32, #tpu.memory_space<vmem>>, vector<8x8xf32>
    tpu.vector_store %arg10[%c0_23, %c0_24], %30 {strides = array<i32>} : memref<8x8xf32, #tpu.memory_space<vmem>>, vector<8x8xf32>,
    return
  }
  func.func @transform_0(%arg0: i32) -> (i32, i32) {
    %c0_i32 = arith.constant 0 : i32
    %c0_i32_0 = arith.constant 0 : i32
    return %arg0, %c0_i32 : i32, i32
  }
  func.func @transform_1(%arg0: i32) -> (i32, i32) {
    %c0_i32 = arith.constant 0 : i32
    %c0_i32_0 = arith.constant 0 : i32
    %c0_i32_1 = arith.constant 0 : i32
    return %c0_i32, %c0_i32_0 : i32, i32
  }
  func.func @transform_2(%arg0: i32) -> (i32, i32) {
    %c0_i32 = arith.constant 0 : i32
    %c0_i32_0 = arith.constant 0 : i32
    %c0_i32_1 = arith.constant 0 : i32
    return %c0_i32, %c0_i32_0 : i32, i32
  }
  func.func @transform_3(%arg0: i32) -> (i32, i32) {
    %c0_i32 = arith.constant 0 : i32
    %c0_i32_0 = arith.constant 0 : i32
    %c0_i32_1 = arith.constant 0 : i32
    return %c0_i32, %c0_i32_0 : i32, i32
  }
  func.func @transform_4(%arg0: i32) -> (i32, i32) {
    %c0_i32 = arith.constant 0 : i32
    %c0_i32_0 = arith.constant 0 : i32
    %c0_i32_1 = arith.constant 0 : i32
    return %c0_i32, %c0_i32_0 : i32, i32
  }
  func.func @transform_5(%arg0: i32) -> (i32, i32) {
    %c0_i32 = arith.constant 0 : i32
    %c0_i32_0 = arith.constant 0 : i32
    %c0_i32_1 = arith.constant 0 : i32
    return %c0_i32, %c0_i32_0 : i32, i32
  }
  func.func @transform_6(%arg0: i32) -> (i32, i32) {
    %c0_i32 = arith.constant 0 : i32
    %c0_i32_0 = arith.constant 0 : i32
    %c0_i32_1 = arith.constant 0 : i32
    return %c0_i32, %c0_i32_0 : i32, i32
  }
  func.func @transform_7(%arg0: i32) -> (i32, i32) {
    %c0_i32 = arith.constant 0 : i32
    %c0_i32_0 = arith.constant 0 : i32
    %c0_i32_1 = arith.constant 0 : i32
    return %c0_i32, %c0_i32_0 : i32, i32
  }
  func.func @transform_8(%arg0: i32) -> (i32, i32) {
    %c0_i32 = arith.constant 0 : i32
    %c0_i32_0 = arith.constant 0 : i32
    %c0_i32_1 = arith.constant 0 : i32
    return %c0_i32, %c0_i32_0 : i32, i32
  }
  func.func @transform_9(%arg0: i32) -> (i32, i32) {
    %c0_i32 = arith.constant 0 : i32
    %c0_i32_0 = arith.constant 0 : i32
    return %arg0, %c0_i32 : i32, i32
  }
}

</mosaic_0001>

<bundles_post_ra>
// kernel: multi_output_nn_forward.1
= control target key start
LH: loop header
LB: loop body
LE: loop exit
PB: predicated region body
PF: predicated region fallthrough
CT: control target
= control target key end

     0   :  { %v543_v1 = vmov 0.0   ;;  %vm544_vm0 = vmmov 0   ;;  %vm59_vm1 = vcmask 261120   ;;  %s696_s0 = inlined_call_operand.vmem [shape: f32[8,32], index: 0, kind: input, shape index: {}]   ;;  %s697_s1 = inlined_call_operand.vmem [shape: bf16[32,64], index: 1, kind: input, shape index: {}]   ;;  %s698_s2 = inlined_call_operand.vmem [shape: f32[1,64], index: 2, kind: input, shape index: {}]   ;;  %s699_s3 = inlined_call_operand.vmem [shape: bf16[64,128], index: 3, kind: input, shape index: {}]   ;;  %s700_s4 = inlined_call_operand.vmem [shape: f32[1,128], index: 4, kind: input, shape index: {}]   ;;  %s701_s5 = inlined_call_operand.vmem [shape: bf16[128,64], index: 5, kind: input, shape index: {}]   ;;  %s702_s6 = inlined_call_operand.vmem [shape: f32[1,64], index: 6, kind: input, shape index: {}]   ;;  %s703_s7 = inlined_call_operand.vmem [shape: bf16[64,8], index: 7, kind: input, shape index: {}]   ;;  %s704_s8 = inlined_call_operand.vmem [shape: f32[1,8], index: 8, kind: input, shape index: {}]   ;;  %s705_s9 = inlined_call_operand.hbm [shape: f32[8,8], index: 9, kind: output, shape index: {}]  }
   0x1   :  { %v503_v0 = vld [vmem:[%s697_s1 + $0x8] sm:$0xff]   ;;  %448 = vmatprep.subr.bf16.mxu0 %v543_v1  ;;  %v504_v2 = vld [vmem:[%s697_s1] sm:$0xff]   ;;  %456 = vmatprep.subr.bf16.mxu1 %v543_v1  ;;  %v505_v4 = vld [vmem:[%s699_s3 + $0x18] sm:$0xff]  }
   0x2   :  { %449 = vmatpush3.bf16.msra.mxu0 %v503_v0  ;;  %452 = vmatprep.mubr.msk.bf16.mxu0 %vm544_vm0, %v543_v1  ;;  %v34_v3 = vld [vmem:[%s696_s0] sm:$0xff]  ;;  %v506_v5 = vld [vmem:[%s699_s3 + $0x10] sm:$0xff]  }
   0x3   :  { %450 = vmatprep.subr.bf16.mxu0 %v543_v1  ;;  %464 = vmatprep.mubr.msk.bf16.mxu1 %vm544_vm0, %v543_v1  ;;  %v35_v6 = vpack.c.bf16 %v34_v3, %v34_v3 }
   0x4   :  { %457 = vmatpush3.bf16.msra.mxu1 %v505_v4 }
   0x5   :  { %458 = vmatprep.subr.bf16.mxu1 %v543_v1 }
   0x6   :  { %451 = vmatpush3.bf16.msra.mxu0 %v504_v2 }
   0x7   :  { %468 = vmatprep.subr.bf16.mxu0 %v543_v1 }
   0x8   :  { %459 = vmatpush3.bf16.msra.mxu1 %v506_v5 }
   0x9   :  { %453 = vmatmul.mubr.msk.bf16.vlgmr.msra.gmra.mxu0 %vm59_vm1, %v35_v6  ;;  %460 = vmatprep.subr.bf16.mxu1 %v543_v1 }
   0xa   :  { %484 = vmatprep.mubr.msk.bf16.mxu0 %vm544_vm0, %v543_v1 }
   0xb   :  { %14 = vsyncpa [#allocation3], 0  ;;  %v507_v7 = vld [vmem:[%s699_s3 + $0x8] sm:$0xff]   ;;  %v508_v8 = vld [vmem:[%s699_s3] sm:$0xff]   ;;  %vm144_vm2 = vcmask 523264   ;;  %s545_s26 = smov [#allocation2]  }
   0xc   :  { %461 = vmatpush3.bf16.msra.mxu1 %v507_v7  ;;  %v509_v9 = vld [vmem:[%s701_s5 + $0x38] sm:$0xff]   ;;  %v510_v10 = vld [vmem:[%s701_s5 + $0x30] sm:$0xff]   ;;  %v511_v11 = vld [vmem:[%s701_s5 + $0x28] sm:$0xff]   ;;  %vm385_vm3 = vcmask 64512  }
   0xd   :  { %462 = vmatprep.subr.bf16.mxu1 %v543_v1  ;;  %469 = vmatpush3.bf16.msra.mxu0 %v509_v9  ;;  %v512_v12 = vld [vmem:[%s701_s5 + $0x20] sm:$0xff]   ;;  %v513_v13 = vld [vmem:[%s701_s5 + $0x18] sm:$0xff]   ;;  %v514_v14 = vld [vmem:[%s701_s5 + $0x10] sm:$0xff]  }
   0xe   :  { %470 = vmatprep.subr.bf16.mxu0 %v543_v1  ;;  %v401_v15 = vld [vmem:[%s698_s2] ss:$0 sm:$0xff]  ;;  %v515_v23 = vld [vmem:[%s701_s5 + $0x8] sm:$0xff]   ;;  %v517_v25 = vld [vmem:[%s703_s7 + $0x18] sm:$0xff]  }
   0xf   :  { %v516_v24 = vld [vmem:[%s701_s5] sm:$0xff]   ;;  %v518_v26 = vld [vmem:[%s703_s7 + $0x10] sm:$0xff]   ;;  %v519_v35 = vld [vmem:[%s703_s7 + $0x8] sm:$0xff]  }
  0x10   :  { %463 = vmatpush3.bf16.msra.mxu1 %v508_v8  ;;  %v405_v27 = vld [vmem:[%s700_s4] ss:$0 sm:$0xff] }
  0x11   :  { %488 = vmatprep.subr.bf16.mxu1 %v543_v1  ;;  %471 = vmatpush3.bf16.msra.mxu0 %v510_v10  ;;  %v520_v36 = vld [vmem:[%s703_s7] sm:$0xff]   ;;  %s393_s7 = sshll.u32 %s545_s26, 4  ;;  %s394_s7 = int_to_ptr.vmem [resolvable:$true] %s393_s7 }
  0x12   :  { %472 = vmatprep.subr.bf16.mxu0 %v543_v1  ;;  %v411_v37 = vld [vmem:[%s702_s6] ss:$0 sm:$0xff]  ;;  %s521_s6 = scalar_lea.vmem %s394_s7, 128  ;;  %p526_p1 = scmp.lt.s32.totalorder %s394_s7, %s394_s7 }
  0x13   :  { %v420_v45 = vld [vmem:[%s704_s8] ss:$0 sm:$0xff]  ;;  %p522_p0 = scmp.ne.s32.totalorder %s394_s7, %s521_s6  ;;  %p527_p2 = scmp.lt.s32.totalorder %s521_s6, %s521_s6 }
  0x15   :  { %473 = vmatpush3.bf16.msra.mxu0 %v511_v11  ;;  %p528_p3 = por %p527_p2, %p526_p1 }
  0x16   :  { %474 = vmatprep.subr.bf16.mxu0 %v543_v1 }
  0x17   :  { %p529_p4 = pnand %p528_p3, %p522_p0 }
  0x19   :  { %475 = vmatpush3.bf16.msra.mxu0 %v512_v12 }
  0x1a   :  { %476 = vmatprep.subr.bf16.mxu0 %v543_v1 }
  0x1d   :  { %477 = vmatpush3.bf16.msra.mxu0 %v513_v13 }
  0x1e   :  { %478 = vmatprep.subr.bf16.mxu0 %v543_v1 }
  0x21   :  { %479 = vmatpush3.bf16.msra.mxu0 %v514_v14 }
  0x22   :  { %480 = vmatprep.subr.bf16.mxu0 %v543_v1 }
  0x25   :  { %481 = vmatpush3.bf16.msra.mxu0 %v515_v23 }
  0x26   :  { %482 = vmatprep.subr.bf16.mxu0 %v543_v1 }
  0x29   :  { %483 = vmatpush3.bf16.msra.mxu0 %v516_v24 }
  0xc9   :  { %v97_v16 = vpop.f32.mrf.mxu0 }
  0xca   :  { %v98_v17 = vadd.f32 %v401_v15, %v97_v16 }
  0xcb   :  { %v454_v18 = vpop.f32.mrf.mxu0 }
  0xcc   :  { %v103_v19 = vmax.f32 %v98_v17, 0.0 }
  0xcd   :  { %v100_v20 = vpop.f32.mrf.mxu0 }
  0xce   :  { %v104_v21 = vpack.c.bf16 %v103_v19, %v103_v19 }
  0xcf   :  { %v455_v22 = vpop.f32.mrf.mxu0 }
  0xd0   :  { %465 = vmatmul.mubr.msk.bf16.vlgmr.msra.gmra.mxu1 %vm144_vm2, %v104_v21 }
  0xd1   :  { %496 = vmatprep.mubr.msk.bf16.mxu1 %vm544_vm0, %v543_v1  ;;  %489 = vmatpush3.bf16.msra.mxu1 %v517_v25 }
  0xd2   :  { %490 = vmatprep.subr.bf16.mxu1 %v543_v1 }
  0xd5   :  { %491 = vmatpush3.bf16.msra.mxu1 %v518_v26 }
  0xd6   :  { %492 = vmatprep.subr.bf16.mxu1 %v543_v1 }
  0xd9   :  { %493 = vmatpush3.bf16.msra.mxu1 %v519_v35 }
  0xda   :  { %494 = vmatprep.subr.bf16.mxu1 %v543_v1 }
  0xdd   :  { %495 = vmatpush3.bf16.msra.mxu1 %v520_v36 }
 0x190   :  { %v182_v28 = vpop.f32.mrf.mxu1 }
 0x191   :  { %v183_v29 = vadd.f32 %v405_v27, %v182_v28 }
 0x192   :  { %v466_v30 = vpop.f32.mrf.mxu1 }
 0x193   :  { %v188_v31 = vmax.f32 %v183_v29, 0.0 }
 0x194   :  { %v185_v32 = vpop.f32.mrf.mxu1 }
 0x195   :  { %v189_v33 = vpack.c.bf16 %v188_v31, %v188_v31 }
 0x196   :  { %v467_v34 = vpop.f32.mrf.mxu1 }
 0x197   :  { %485 = vmatmul.mubr.bf16.vlgmr.msra.gmra.mxu0 %v189_v33 }
 0x257   :  { %v295_v38 = vpop.f32.mrf.mxu0 }
 0x258   :  { %v296_v39 = vadd.f32 %v411_v37, %v295_v38 }
 0x259   :  { %v486_v40 = vpop.f32.mrf.mxu0 }
 0x25a   :  { %v301_v41 = vmax.f32 %v296_v39, 0.0 }
 0x25b   :  { %v298_v42 = vpop.f32.mrf.mxu0 }
 0x25c   :  { %v302_v43 = vpack.c.bf16 %v301_v41, %v301_v41 }
 0x25d   :  { %v487_v44 = vpop.f32.mrf.mxu0 }
 0x25e   :  { %497 = vmatmul.mubr.msk.bf16.vlgmr.msra.gmra.mxu1 %vm144_vm2, %v302_v43 }
 0x31e   :  { %v379_v46 = vpop.f32.mrf.mxu1 }
 0x31f   :  { %v380_v47 = vadd.f32 %v420_v45, %v379_v46 }
 0x320   :  { %v498_v48 = vpop.f32.mrf.mxu1 }
 0x321   :  { %386 = vst.msk [vmem:[#allocation2] sm:$0xff] %vm385_vm3, %v380_v47 }
 0x322   :  { %v382_v49 = vpop.f32.mrf.mxu1 }
 0x323   :  { %532 = shalt.err (!%p529_p4)
}
 0x324   :  { %396 = dma.vmem_to_hbm [thread:$0]  %s394_s7, 128, %s705_s9, [#allocation3]   ;;  %v499_v50 = vpop.f32.mrf.mxu1 }
 0x325   :  { %541 = dma.done.wait [#allocation3], 128  }
 0x326   :  { %542 = vsyncadd [#allocation3], 4294967168 }
 0x327   :  { %400 = vsyncpa [#allocation3], 1 }

</bundles_post_ra>
